<compile_context>
chip_gen: v7x
topology: tpu7x:2x2x1
jax: 0.10.0
libtpu: 0.0.40
codegen_flags: <defaults>
</compile_context>

<pallas_src>
import math
import functools

import jax
import jax.numpy as jnp
from jax.experimental import pallas as pl
from jax.experimental.pallas import tpu as pltpu


def _pick_tile(dim, target):
    """Largest MXU-friendly tile <= target that divides dim (falls back to full dim)."""
    if dim <= target:
        return dim
    return target if dim % target == 0 else dim


# ------------------------- tiled matmul (c_attn projection) ------------------------- #

def _matmul_kernel(x_ref, w_ref, o_ref, acc_ref):
    k = pl.program_id(2)

    @pl.when(k == 0)
    def _():
        acc_ref[...] = jnp.zeros_like(acc_ref)

    acc_ref[...] += jnp.dot(x_ref[...], w_ref[...],
                            preferred_element_type=jnp.float32)

    @pl.when(k == pl.num_programs(2) - 1)
    def _():
        o_ref[...] = acc_ref[...].astype(o_ref.dtype)


def matmul(x, w, out_dtype=jnp.float32):
    """x: (M, K), w: (K, N) (bf16 recommended) -> (M, N) with f32 accumulation."""
    M, K = x.shape
    _, N = w.shape
    tm = _pick_tile(M, 256)
    tn = _pick_tile(N, 256)
    tk = _pick_tile(K, 512)
    return pl.pallas_call(
        _matmul_kernel,
        out_shape=jax.ShapeDtypeStruct((M, N), out_dtype),
        grid=(M // tm, N // tn, K // tk),
        in_specs=[pl.BlockSpec((tm, tk), lambda i, j, k: (i, k)),
                  pl.BlockSpec((tk, tn), lambda i, j, k: (k, j))],
        out_specs=pl.BlockSpec((tm, tn), lambda i, j, k: (i, j)),
        scratch_shapes=[pltpu.VMEM((tm, tn), jnp.float32)],
        compiler_params=pltpu.CompilerParams(
            dimension_semantics=("parallel", "parallel", "arbitrary"),
            vmem_limit_bytes=32 * 1024 * 1024),
    )(x, w)


# -------------------------------- RoPE kernel --------------------------------------- #

def _rope_kernel(x_ref, cos_ref, sin_ref, o_ref):
    # x: (t_tile, hd) with features pre-permuted to [evens | odds] per head.
    x = x_ref[...].astype(jnp.float32)
    h2 = x.shape[-1] // 2
    x1 = x[:, :h2]
    x2 = x[:, h2:]
    c = cos_ref[...]          # (t_tile, hd/2)
    s = sin_ref[...]
    rotated = jnp.concatenate([x1 * c - x2 * s, x2 * c + x1 * s], axis=-1)
    o_ref[...] = rotated.astype(o_ref.dtype)


def apply_rope(x, cos_half, sin_half):
    """x: (N, T, hd) f32 (features in [evens|odds] order) -> (N, T, hd) bf16."""
    N, T, hd = x.shape
    h2 = hd // 2
    t_tile = _pick_tile(T, 256)
    return pl.pallas_call(
        _rope_kernel,
        out_shape=jax.ShapeDtypeStruct((N, T, hd), jnp.bfloat16),
        grid=(N, T // t_tile),
        in_specs=[pl.BlockSpec((None, t_tile, hd), lambda n, t: (n, t, 0)),
                  pl.BlockSpec((t_tile, h2), lambda n, t: (t, 0)),
                  pl.BlockSpec((t_tile, h2), lambda n, t: (t, 0))],
        out_specs=pl.BlockSpec((None, t_tile, hd), lambda n, t: (n, t, 0)),
        compiler_params=pltpu.CompilerParams(
            dimension_semantics=("parallel", "parallel"),
            vmem_limit_bytes=32 * 1024 * 1024),
    )(x, cos_half, sin_half)


# ------------------------ flash-style causal attention (GQA) ------------------------ #

def _flash_attn_kernel(q_ref, k_ref, v_ref, o_ref, m_scr, l_scr, acc_scr,
                       *, scale, q_tile, kv_tile):
    qi = pl.program_id(2)
    ki = pl.program_id(3)

    @pl.when(ki == 0)
    def _():
        m_scr[...] = jnp.full_like(m_scr, -jnp.inf)
        l_scr[...] = jnp.zeros_like(l_scr)
        acc_scr[...] = jnp.zeros_like(acc_scr)

    # Skip kv tiles strictly above the causal diagonal (MXU/VPU work skipped;
    # the clamped index_map below also avoids re-DMA of those tiles).
    @pl.when(ki * kv_tile <= qi * q_tile + (q_tile - 1))
    def _():
        q = q_ref[...]                       # (q_tile, hd)  bf16
        k = k_ref[...]                       # (kv_tile, hd) bf16
        v = v_ref[...]                       # (kv_tile, hd) bf16
        # No explicit transpose: contract the last dims directly.
        s = jax.lax.dot_general(
            q, k, (((1,), (1,)), ((), ())),
            preferred_element_type=jnp.float32) * scale          # (q_tile, kv_tile) f32
        q_pos = qi * q_tile + jax.lax.broadcasted_iota(jnp.int32, s.shape, 0)
        k_pos = ki * kv_tile + jax.lax.broadcasted_iota(jnp.int32, s.shape, 1)
        s = jnp.where(q_pos >= k_pos, s, -1e30)                   # finite fill: no NaN rows
        m_prev = m_scr[...]
        m_new = jnp.maximum(m_prev, jnp.max(s, axis=-1, keepdims=True))
        alpha = jnp.exp(m_prev - m_new)
        p = jnp.exp(s - m_new)
        l_scr[...] = alpha * l_scr[...] + jnp.sum(p, axis=-1, keepdims=True)
        acc_scr[...] = alpha * acc_scr[...] + jnp.dot(
            p.astype(v.dtype), v, preferred_element_type=jnp.float32)
        m_scr[...] = m_new

    @pl.when(ki == pl.num_programs(3) - 1)
    def _():
        o_ref[...] = (acc_scr[...] *
                      pl.reciprocal(l_scr[...], approx=True)).astype(o_ref.dtype)


def flash_attention(q, k, v, n_rep, scale):
    """q: (B, H, T, hd) bf16; k, v: (B, H//n_rep, T, hd) bf16 (GQA, un-replicated)."""
    B, H, T, hd = q.shape
    KVH = k.shape[1]
    q_tile = _pick_tile(T, 128)
    kv_tile = _pick_tile(T, 128)

    def q_index(b, h, qi, ki):
        return (b, h, qi, 0)

    def kv_index(b, h, qi, ki):
        # GQA: map query head -> kv head; clamp kv block into the causal band so
        # Pallas does not re-DMA tiles whose compute is skipped.
        last = ((qi + 1) * q_tile - 1) // kv_tile
        return (b, h // n_rep, jnp.minimum(ki, last), 0)

    kernel = functools.partial(_flash_attn_kernel, scale=scale,
                               q_tile=q_tile, kv_tile=kv_tile)
    flops = 2 * 2 * B * H * T * T * hd                      # QK^T + PV (upper bound)
    bytes_accessed = (B * H * T * hd * (2 + 4)              # q read (bf16) + o write (f32)
                      + 2 * B * KVH * T * hd * 2)           # k, v reads (bf16)
    return pl.pallas_call(
        kernel,
        out_shape=jax.ShapeDtypeStruct((B, H, T, hd), jnp.float32),
        grid=(B, H, T // q_tile, T // kv_tile),
        in_specs=[pl.BlockSpec((None, None, q_tile, hd), q_index),
                  pl.BlockSpec((None, None, kv_tile, hd), kv_index),
                  pl.BlockSpec((None, None, kv_tile, hd), kv_index)],
        out_specs=pl.BlockSpec((None, None, q_tile, hd), q_index),
        scratch_shapes=[pltpu.VMEM((q_tile, 1), jnp.float32),   # running max
                        pltpu.VMEM((q_tile, 1), jnp.float32),   # running sum
                        pltpu.VMEM((q_tile, hd), jnp.float32)], # output accumulator
        compiler_params=pltpu.CompilerParams(
            dimension_semantics=("parallel", "parallel", "parallel", "arbitrary"),
            vmem_limit_bytes=32 * 1024 * 1024),
        cost_estimate=pl.CostEstimate(flops=flops,
                                      transcendentals=B * H * T * T,
                                      bytes_accessed=bytes_accessed),
    )(q, k, v)


# ----------------------------------- JAX glue ---------------------------------------- #

def _permute_qk_weight(w, n_head, n_kv_head, hd):
    """Reorder q/k output features per head to [evens, odds] so rotate-half RoPE in the
    kernel is exactly equivalent to the standard interleaved rotation (scores unchanged)."""
    perm_head = jnp.concatenate([jnp.arange(0, hd, 2), jnp.arange(1, hd, 2)])

    def permute_block(block):
        n = block.shape[0] // hd
        idx = (jnp.arange(n)[:, None] * hd + perm_head[None, :]).reshape(-1)
        return block[idx]

    q_w = permute_block(w[: n_head * hd])
    k_w = permute_block(w[n_head * hd:(n_head + n_kv_head) * hd])
    v_w = w[(n_head + n_kv_head) * hd:]
    return jnp.concatenate([q_w, k_w, v_w], axis=0)


def causal_self_attention(x, w_attn, cos_half, sin_half, n_head, n_kv_head):
    B, T, C = x.shape
    hd = C // n_head
    n_rep = n_head // n_kv_head

    # c_attn: y = x @ W^T (no bias).  bf16 MXU operands, f32 accumulation.
    w_perm = _permute_qk_weight(w_attn, n_head, n_kv_head, hd)
    qkv = matmul(x.reshape(B * T, C).astype(jnp.bfloat16),
                 w_perm.T.astype(jnp.bfloat16)).reshape(B, T, -1)

    q = qkv[..., : n_head * hd].reshape(B, T, n_head, hd)
    k = qkv[..., n_head * hd:(n_head + n_kv_head) * hd].reshape(B, T, n_kv_head, hd)
    v = qkv[..., (n_head + n_kv_head) * hd:].reshape(B, T, n_kv_head, hd)

    # (B, T, H, hd) -> (B, H, T, hd)
    q, k, v = (jnp.transpose(a, (0, 2, 1, 3)) for a in (q, k, v))

    # RoPE (rotate-half on pre-permuted features == standard interleaved RoPE); outputs bf16.
    q = apply_rope(q.reshape(B * n_head, T, hd), cos_half, sin_half).reshape(B, n_head, T, hd)
    k = apply_rope(k.reshape(B * n_kv_head, T, hd), cos_half, sin_half).reshape(B, n_kv_head, T, hd)
    v = v.astype(jnp.bfloat16)

    # Flash attention with in-kernel causal mask and GQA via index_map (no repeat_kv).
    y = flash_attention(q, k, v, n_rep, 1.0 / math.sqrt(hd))     # (B, H, T, hd) f32
    y = jnp.transpose(y, (0, 2, 1, 3)).reshape(B, T, C)
    # NOTE: the reference forward never applies self.c_proj, so neither do we.
    return y


def reference_attention(x, w_attn, cos_half, sin_half, n_head, n_kv_head):
    """Plain-jnp reference (original interleaved RoPE, un-permuted weights, repeat_kv)."""
    B, T, C = x.shape
    hd = C // n_head
    n_rep = n_head // n_kv_head
    qkv = jnp.dot(x.reshape(B * T, C).astype(jnp.bfloat16),
                  w_attn.T.astype(jnp.bfloat16),
                  preferred_element_type=jnp.float32).reshape(B, T, -1)
    q = qkv[..., : n_head * hd].reshape(B, T, n_head, hd)
    k = qkv[..., n_head * hd:(n_head + n_kv_head) * hd].reshape(B, T, n_kv_head, hd)
    v = qkv[..., (n_head + n_kv_head) * hd:].reshape(B, T, n_kv_head, hd)

    def rope_interleaved(t):
        tr, ti = t[..., 0::2], t[..., 1::2]
        c = cos_half[None, :, None, :]
        s = sin_half[None, :, None, :]
        return jnp.stack([tr * c - ti * s, tr * s + ti * c], axis=-1).reshape(t.shape)

    q, k = rope_interleaved(q), rope_interleaved(k)
    k = jnp.repeat(k, n_rep, axis=2)
    v = jnp.repeat(v, n_rep, axis=2)
    q, k, v = (jnp.transpose(a, (0, 2, 1, 3)).astype(jnp.bfloat16) for a in (q, k, v))
    s = jnp.einsum("bhqd,bhkd->bhqk", q, k,
                   preferred_element_type=jnp.float32) / math.sqrt(hd)
    mask = jnp.tril(jnp.ones((T, T), jnp.float32))
    s = jnp.where(mask[None, None] == 0, -jnp.inf, s)
    p = jax.nn.softmax(s, axis=-1)
    y = jnp.einsum("bhqk,bhkd->bhqd", p.astype(jnp.bfloat16), v,
                   preferred_element_type=jnp.float32)
    return jnp.transpose(y, (0, 2, 1, 3)).reshape(B, T, C)


# ------------------------------------- main ------------------------------------------ #

if __name__ == "__main__":
    # Small config consistent with the module: C % n_head == 0, GQA with n_rep = 2.
    B, T, C = 2, 8, 32
    n_head, n_kv_head = 4, 2
    hd = C // n_head                                    # 8
    out_dim = (n_head + 2 * n_kv_head) * hd             # 64

    key = jax.random.PRNGKey(0)
    k_x, k_w = jax.random.split(key)
    x = jax.random.normal(k_x, (B, T, C), jnp.float32)
    # c_attn.weight: (out_features, in_features), no bias.
    w_attn = jax.random.normal(k_w, (out_dim, C), jnp.float32) * (1.0 / math.sqrt(C))

    # Rotary frequencies (llama-3 style), cos/sin of shape (T, hd//2).
    theta = 500000.0
    inv_freq = 1.0 / (theta ** (jnp.arange(0, hd, 2, dtype=jnp.float32) / hd))
    angles = jnp.outer(jnp.arange(T, dtype=jnp.float32), inv_freq)
    cos_half, sin_half = jnp.cos(angles), jnp.sin(angles)

    y = causal_self_attention(x, w_attn, cos_half, sin_half, n_head, n_kv_head)
    y = jax.block_until_ready(y)

    y_ref = reference_attention(x, w_attn, cos_half, sin_half, n_head, n_kv_head)
    assert y.shape == (B, T, C)
    assert jnp.allclose(y, y_ref, atol=2e-2, rtol=2e-2), "mismatch vs reference"

    print("KERNEL_OK")
</pallas_src>

<mosaic_0001>
module attributes {stable_mosaic.version = 11 : i64} {
  func.func @_matmul_kernel(%arg0: i32, %arg1: i32, %arg2: i32, %arg3: memref<16x32xbf16, #tpu.memory_space<vmem>>, %arg4: memref<32x64xbf16, #tpu.memory_space<vmem>>, %arg5: memref<16x64xf32, #tpu.memory_space<vmem>>, %arg6: memref<16x64xf32, #tpu.memory_space<vmem>>) attributes {dimension_semantics = [#tpu.dimension_semantics<parallel>, #tpu.dimension_semantics<parallel>, #tpu.dimension_semantics<arbitrary>], iteration_bounds = array<i64: 1, 1, 1>, scalar_prefetch = 0 : i64, scratch_operands = 1 : i64, tpu.core_type = #tpu.core_type<tc>, window_params = [{transform_indices = @transform_0, window_bounds = array<i64: 16, 32>}, {transform_indices = @transform_1, window_bounds = array<i64: 32, 64>}, {transform_indices = @transform_2, window_bounds = array<i64: 16, 64>}]} {
    %c0_i32 = arith.constant 0 : i32
    %0 = arith.cmpi eq, %arg2, %c0_i32 : i32
    %1 = arith.extui %0 : i1 to i32
    %c0_i32_0 = arith.constant 0 : i32
    %2 = arith.cmpi ne, %1, %c0_i32_0 : i32
    scf.if %2 {
      %cst_10 = arith.constant 0.000000e+00 : f32
      %12 = vector.broadcast %cst_10 : f32 to vector<16x64xf32>
      %c0_11 = arith.constant 0 : index
      %c0_12 = arith.constant 0 : index
      %13 = vector.load %arg6[%c0_11, %c0_12] : memref<16x64xf32, #tpu.memory_space<vmem>>, vector<16x64xf32>
      tpu.vector_store %arg6[%c0_11, %c0_12], %12 {strides = array<i32>} : memref<16x64xf32, #tpu.memory_space<vmem>>, vector<16x64xf32>,
    } else {
    }
    %c0 = arith.constant 0 : index
    %c0_1 = arith.constant 0 : index
    %3 = vector.load %arg6[%c0, %c0_1] : memref<16x64xf32, #tpu.memory_space<vmem>>, vector<16x64xf32>
    %c0_2 = arith.constant 0 : index
    %c0_3 = arith.constant 0 : index
    %4 = vector.load %arg3[%c0_2, %c0_3] : memref<16x32xbf16, #tpu.memory_space<vmem>>, vector<16x32xbf16>
    %c0_4 = arith.constant 0 : index
    %c0_5 = arith.constant 0 : index
    %5 = vector.load %arg4[%c0_4, %c0_5] : memref<32x64xbf16, #tpu.memory_space<vmem>>, vector<32x64xbf16>
    %cst = arith.constant dense<0.000000e+00> : vector<16x64xf32>
    %6 = tpu.matmul %4, %5, %cst {dimension_numbers = #tpu.dot_dimension_numbers<[1], [0], [0], [1], [0, 0, 1, 1], [], []>} : vector<16x32xbf16>, vector<32x64xbf16>, vector<16x64xf32> -> vector<16x64xf32>
    %7 = arith.addf %3, %6 : vector<16x64xf32>
    %c0_6 = arith.constant 0 : index
    %c0_7 = arith.constant 0 : index
    %8 = vector.load %arg6[%c0_6, %c0_7] : memref<16x64xf32, #tpu.memory_space<vmem>>, vector<16x64xf32>
    tpu.vector_store %arg6[%c0_6, %c0_7], %7 {strides = array<i32>} : memref<16x64xf32, #tpu.memory_space<vmem>>, vector<16x64xf32>,
    %c0_i32_8 = arith.constant 0 : i32
    %9 = arith.cmpi eq, %arg2, %c0_i32_8 : i32
    %10 = arith.extui %9 : i1 to i32
    %c0_i32_9 = arith.constant 0 : i32
    %11 = arith.cmpi ne, %10, %c0_i32_9 : i32
    scf.if %11 {
      %c0_10 = arith.constant 0 : index
      %c0_11 = arith.constant 0 : index
      %12 = vector.load %arg6[%c0_10, %c0_11] : memref<16x64xf32, #tpu.memory_space<vmem>>, vector<16x64xf32>
      %c0_12 = arith.constant 0 : index
      %c0_13 = arith.constant 0 : index
      %13 = vector.load %arg5[%c0_12, %c0_13] : memref<16x64xf32, #tpu.memory_space<vmem>>, vector<16x64xf32>
      tpu.vector_store %arg5[%c0_12, %c0_13], %12 {strides = array<i32>} : memref<16x64xf32, #tpu.memory_space<vmem>>, vector<16x64xf32>,
    } else {
    }
    return
  }
  func.func @transform_0(%arg0: i32, %arg1: i32, %arg2: i32) -> (i32, i32) {
    %c0_i32 = arith.constant 0 : i32
    return %arg0, %arg2 : i32, i32
  }
  func.func @transform_1(%arg0: i32, %arg1: i32, %arg2: i32) -> (i32, i32) {
    %c0_i32 = arith.constant 0 : i32
    return %arg2, %arg1 : i32, i32
  }
  func.func @transform_2(%arg0: i32, %arg1: i32, %arg2: i32) -> (i32, i32) {
    %c0_i32 = arith.constant 0 : i32
    return %arg0, %arg1 : i32, i32
  }
}

</mosaic_0001>

<bundles_post_ra>
// kernel: tpu_custom_call.1
= control target key start
LH: loop header
LB: loop body
LE: loop exit
PB: predicated region body
PF: predicated region fallthrough
CT: control target
= control target key end

     0   :  { %7 = vsyncpa [#allocation4], 0  ;;  %s313_s0 = inlined_call_operand.hbm [shape: bf16[16,32], index: 0, kind: input, shape index: {}]   ;;  %s314_s1 = inlined_call_operand.hbm [shape: bf16[32,64], index: 1, kind: input, shape index: {}]   ;;  %s315_s2 = inlined_call_operand.hbm [shape: f32[16,64], index: 2, kind: output, shape index: {}]  }
   0x1   :  { %8 = vsyncpa [#allocation7], 0 }
   0x2   :  { %9 = vsyncpa [#allocation5], 0  ;;  %s247_s9 = smov [#allocation3]   ;;  %s175_s13 = scalar_lea.hbm %s313_s0, 128 }
   0x3   :  { %s15_s10 = sshll.u32 %s247_s9, 4  ;;  %p176_p0 = scmp.ne.s32.totalorder %s313_s0, %s175_s13  ;;  %s16_s10 = int_to_ptr.vmem [resolvable:$true] %s15_s10 }
   0x4   :  { %p179_p1 = scmp.lt.u32.totalorder %s175_s13, %s313_s0 }
   0x6   :  { %p181_p2 = pnand %p179_p1, %p176_p0 }
   0x8   :  { %184 = shalt.err (!%p181_p2)
}
   0x9   :  { %s185_s18 = scalar_lea.vmem %s16_s10, 128  ;;  %p190_p4 = scmp.lt.s32.totalorder %s16_s10, %s16_s10 }
   0xa   :  { %p186_p3 = scmp.ne.s32.totalorder %s16_s10, %s185_s18  ;;  %p191_p5 = scmp.lt.s32.totalorder %s185_s18, %s185_s18 }
   0xc   :  { %p192_p6 = por %p191_p5, %p190_p4 }
   0xe   :  { %p193_p7 = pnand %p192_p6, %p186_p3 }
  0x10   :  { %196 = shalt.err (!%p193_p7)
}
  0x11   :  { %s248_s19 = smov 64   ;;  %s249_s20 = smov 4  }
  0x12   :  { %21 = dma.hbm_to_vmem [thread:$0]  %s313_s0, 128, %s16_s10, [#allocation4], %s248_s19, %s248_s19, %s249_s20  }
  0x13   :  { %s250_s23 = smov [#allocation6]   ;;  %s197_s27 = scalar_lea.hbm %s314_s1, 256 }
  0x14   :  { %s27_s24 = sshll.u32 %s250_s23, 4  ;;  %p198_p8 = scmp.ne.s32.totalorder %s314_s1, %s197_s27  ;;  %s28_s24 = int_to_ptr.vmem [resolvable:$true] %s27_s24 }
  0x15   :  { %p201_p9 = scmp.lt.u32.totalorder %s197_s27, %s314_s1 }
  0x17   :  { %p203_p10 = pnand %p201_p9, %p198_p8 }
  0x19   :  { %206 = shalt.err (!%p203_p10)
}
  0x1a   :  { %s207_s4 = scalar_lea.vmem %s28_s24, 256  ;;  %p212_p12 = scmp.lt.s32.totalorder %s28_s24, %s28_s24 }
  0x1b   :  { %p208_p11 = scmp.ne.s32.totalorder %s28_s24, %s207_s4  ;;  %p213_p13 = scmp.lt.s32.totalorder %s207_s4, %s207_s4 }
  0x1d   :  { %p214_p0 = por %p213_p13, %p212_p12 }
  0x1f   :  { %p215_p1 = pnand %p214_p0, %p208_p11 }
  0x21   :  { %218 = shalt.err (!%p215_p1)
}
  0x22   :  { %33 = dma.hbm_to_vmem [thread:$0]  %s314_s1, 256, %s28_s24, [#allocation7], %s248_s19, %s248_s19, %s249_s20  }
  0x23   :  { %241 = dma.done.wait [#allocation4], 128  }
  0x24   :  { %242 = vsyncadd [#allocation4], 4294967168 }
  0x25   :  { %243 = dma.done.wait [#allocation7], 256  }
  0x26   :  { %244 = vsyncadd [#allocation7], 4294967040  ;;  %vm45_vm0 = vcmask 523264   ;;  %v251_v0 = vmov 0.0   ;;  %vm252_vm1 = vmmov 0   ;;  %v172_v1 = vld [vmem:[#allocation6] sm:$0xff]  }
  0x27   :  { %46 = vst.msk [vmem:[#allocation2] sm:$0xff] %vm45_vm0, %v251_v0  ;;  %47 = vst.msk [vmem:[#allocation2 + $0x8] sm:$0xff] %vm45_vm0, %v251_v0  ;;  %155 = vmatprep.subr.bf16.mxu0 %v251_v0  ;;  %159 = vmatprep.mubr.msk.bf16.mxu0 %vm252_vm1, %v251_v0  ;;  %v173_v2 = vld [vmem:[#allocation6 + $0x8] sm:$0xff]   ;;  %v174_v3 = vld [vmem:[#allocation3] sm:$0xff]   ;;  %vm73_vm2 = vcmask 261120   ;;  %s253_s1 = smov [#allocation8]  }
  0x28   :  { %156 = vmatpush3.bf16.msra.mxu0 %v172_v1  ;;  %s135_s6 = sshll.u32 %s253_s1, 4  ;;  %s136_s6 = int_to_ptr.vmem [resolvable:$true] %s135_s6 }
  0x29   :  { %157 = vmatprep.subr.bf16.mxu0 %v251_v0  ;;  %s219_s7 = scalar_lea.vmem %s136_s6, 256  ;;  %p224_p3 = scmp.lt.s32.totalorder %s136_s6, %s136_s6 }
  0x2a   :  { %p220_p2 = scmp.ne.s32.totalorder %s136_s6, %s219_s7  ;;  %p225_p4 = scmp.lt.s32.totalorder %s219_s7, %s219_s7 }
  0x2c   :  { %158 = vmatpush3.bf16.msra.mxu0 %v173_v2  ;;  %p226_p5 = por %p225_p4, %p224_p3 }
  0x2e   :  { %v48_v4 = vld [vmem:[#allocation2] sm:$0xff]  ;;  %v49_v6 = vld [vmem:[#allocation2 + $0x8] sm:$0xff]  ;;  %p227_p6 = pnand %p226_p5, %p220_p2 }
  0x2f   :  { %160 = vmatmul.mubr.msk.bf16.vlgmr.msra.gmra.mrb[0].mxu0 %vm73_vm2, %v174_v3 }
 0x102   :  { %v111_v5 = vpop.f32.mrb[0].mxu0 }
 0x103   :  { %v118_v7 = vadd.f32 %v111_v5, %v48_v4  ;;  %v161_v8 = vpop.f32.mrb[1].mxu0 }
 0x104   :  { %v114_v9 = vpop.f32.mrb[2].mxu0 }
 0x105   :  { %121 = vst.msk [vmem:[#allocation2] sm:$0xff] %vm45_vm0, %v118_v7  ;;  %v119_v10 = vadd.f32 %v114_v9, %v49_v6  ;;  %v162_v11 = vpop.f32.mrb[3].mxu0 }
 0x107   :  { %122 = vst.msk [vmem:[#allocation2 + $0x8] sm:$0xff] %vm45_vm0, %v119_v10 }
 0x10c   :  { %v126_v12 = vld [vmem:[#allocation2] sm:$0xff] }
 0x10d   :  { %128 = vst.msk [vmem:[#allocation8] sm:$0xff] %vm45_vm0, %v126_v12 }
 0x10e   :  { %v127_v13 = vld [vmem:[#allocation2 + $0x8] sm:$0xff] }
 0x10f   :  { %129 = vst.msk [vmem:[#allocation8 + $0x8] sm:$0xff] %vm45_vm0, %v127_v13 }
 0x110   :  { %230 = shalt.err (!%p227_p6)
}
 0x111   :  { %s231_s10 = scalar_lea.hbm %s315_s2, 256 }
 0x112   :  { %p232_p7 = scmp.ne.s32.totalorder %s315_s2, %s231_s10  ;;  %p235_p8 = scmp.lt.u32.totalorder %s231_s10, %s315_s2 }
 0x114   :  { %p237_p9 = pnand %p235_p8, %p232_p7 }
 0x116   :  { %240 = shalt.err (!%p237_p9)
}
 0x117   :  { %s254_s15 = smov 128   ;;  %s255_s16 = smov 8  }
 0x118   :  { %141 = dma.vmem_to_hbm [thread:$0]  %s136_s6, 256, %s315_s2, [#allocation5], %s254_s15, %s254_s15, %s255_s16  }
 0x119   :  { %245 = dma.done.wait [#allocation5], 256  }
 0x11a   :  { %246 = vsyncadd [#allocation5], 4294967040 }
 0x11b   :  { %145 = vsyncpa [#allocation4], 1 }
 0x11c   :  { %146 = vsyncpa [#allocation7], 1 }
 0x11d   :  { %147 = vsyncpa [#allocation5], 1 }

</bundles_post_ra>
